<compile_context>
chip_gen: v7x
topology: tpu7x:2x2x1
jax: 0.10.0
libtpu: 0.0.40
codegen_flags: <defaults>
</compile_context>

<pallas_src>
from functools import partial

import jax
import jax.numpy as jnp
from jax.experimental import pallas as pl
from jax.experimental.pallas import tpu as pltpu

LANE = 128


def _round_up(x, m):
    return ((x + m - 1) // m) * m


def generator_kernel(z_ref,
                     w6_ref, b6_ref,
                     w5_ref, b5_ref,
                     w4_ref, b4_ref,
                     w3_ref, b3_ref,
                     w2_ref, b2_ref,
                     w1_ref, b1_ref,
                     out_ref):
    """One batch tile through the fused 6-layer MLP.

    Weights are bf16, biases f32. Each Linear is a bf16 x bf16 MXU matmul with
    f32 accumulation; bias-add + ReLU run in f32 on the VPU; the activation is
    cast back to bf16 only at the next MXU input. fc1 has no ReLU.
    """
    def linear(x, w_ref, b_ref, relu):
        y = jnp.dot(x.astype(jnp.bfloat16), w_ref[...],
                    preferred_element_type=jnp.float32)
        y = y + b_ref[...]                       # (1, D) f32 bias broadcasts over batch
        return jnp.maximum(y, 0.0) if relu else y

    h = z_ref[...]                               # bf16 activation tile (tm, in_pad)
    h = linear(h, w6_ref, b6_ref, True)          # h_dim6 -> h_dim5
    h = linear(h, w5_ref, b5_ref, True)          # h_dim5 -> h_dim4
    h = linear(h, w4_ref, b4_ref, True)          # h_dim4 -> h_dim3
    h = linear(h, w3_ref, b3_ref, True)          # h_dim3 -> h_dim2
    h = linear(h, w2_ref, b2_ref, True)          # h_dim2 -> h_dim1
    y = linear(h, w1_ref, b1_ref, False)         # h_dim1 -> x_dim (no activation)
    out_ref[...] = y.astype(out_ref.dtype)


def pad_params(params):
    """Zero-pad every weight/bias to 128-lane multiples; cast weights to bf16.

    Call once and reuse the result across forward passes.
    params: list of (W_T (in, out) f32, b (1, out) f32) for fc6..fc1.
    """
    padded = []
    for w, b in params:
        in_d, out_d = w.shape
        in_p, out_p = _round_up(in_d, LANE), _round_up(out_d, LANE)
        w_p = jnp.zeros((in_p, out_p), jnp.float32).at[:in_d, :out_d].set(w)
        b_p = jnp.zeros((1, out_p), jnp.float32).at[:, :out_d].set(b)
        padded.append((w_p.astype(jnp.bfloat16), b_p))
    return padded


@partial(jax.jit, static_argnames=("tm",))
def _generator_pallas(z_p, flat_params, tm):
    """z_p: (B_pad, in_pad) bf16, B_pad % tm == 0. flat_params: [w6,b6,...,w1,b1]."""
    B_pad, in_pad = z_p.shape
    out_pad = flat_params[-2].shape[1]

    in_specs = [pl.BlockSpec((tm, in_pad), lambda i: (i, 0))]
    for p in flat_params:
        # Weights/biases resident in VMEM across all batch tiles (same block index
        # every grid step -> DMA'd once, kept on chip).
        in_specs.append(pl.BlockSpec(p.shape, lambda i: (0, 0)))

    return pl.pallas_call(
        generator_kernel,
        out_shape=jax.ShapeDtypeStruct((B_pad, out_pad), jnp.float32),
        grid=(B_pad // tm,),
        in_specs=in_specs,
        out_specs=pl.BlockSpec((tm, out_pad), lambda i: (i, 0)),
        compiler_params=pltpu.CompilerParams(
            dimension_semantics=("parallel",),   # shards batch tiles across TCs on v7x
            vmem_limit_bytes=16 << 20,
        ),
    )(z_p, *flat_params)


def generator_forward(z, pparams, x_dim):
    """z: (B, h_dim6) f32.  pparams: output of pad_params().  Returns (B, x_dim) f32."""
    B, in_dim = z.shape
    in_pad = pparams[0][0].shape[0]

    # Batch tile: 256 rows fills the v6e/v7x MXU (128 would suit v5e); tiny
    # batches collapse to a single 8-row-aligned tile.
    tm = 256 if B >= 256 else _round_up(B, 8)
    B_pad = _round_up(B, tm)

    z_p = jnp.zeros((B_pad, in_pad), jnp.float32).at[:B, :in_dim].set(z)
    z_p = z_p.astype(jnp.bfloat16)               # halves activation DMA bytes

    flat_params = [p for wb in pparams for p in wb]
    out = _generator_pallas(z_p, flat_params, tm)
    return out[:B, :x_dim]


def make_params(key, dims):
    """PyTorch-style init: uniform(-1/sqrt(fan_in), 1/sqrt(fan_in)).

    dims = [h_dim6, h_dim5, h_dim4, h_dim3, h_dim2, h_dim1, x_dim]
    Returns list of (W_T (in,out) f32, b (1,out) f32) for fc6..fc1.
    """
    params = []
    for i in range(len(dims) - 1):
        in_d, out_d = dims[i], dims[i + 1]
        key, kw, kb = jax.random.split(key, 3)
        bound = 1.0 / (in_d ** 0.5)
        w = jax.random.uniform(kw, (out_d, in_d), jnp.float32, -bound, bound)
        b = jax.random.uniform(kb, (out_d,), jnp.float32, -bound, bound)
        params.append((w.T, b.reshape(1, out_d)))
    return params


def reference_forward_bf16(z, params):
    """Emulates the kernel's exact numerics (bf16 matmul operands, f32 accumulate)."""
    h = z
    for i, (w, b) in enumerate(params):
        h = jnp.dot(h.astype(jnp.bfloat16), w.astype(jnp.bfloat16),
                    preferred_element_type=jnp.float32) + b[0]
        if i < len(params) - 1:
            h = jnp.maximum(h, 0.0)
    return h


def reference_forward_f32(z, params):
    """Pure-f32 reference of the PyTorch forward (semantic sanity check)."""
    h = z
    for i, (w, b) in enumerate(params):
        h = h @ w + b[0]
        if i < len(params) - 1:
            h = jnp.maximum(h, 0.0)
    return h


if __name__ == "__main__":
    # h_dim6 -> h_dim5 -> h_dim4 -> h_dim3 -> h_dim2 -> h_dim1 -> x_dim
    h_dim6, h_dim5, h_dim4, h_dim3, h_dim2, h_dim1, x_dim = 32, 64, 64, 128, 128, 128, 256
    B = 8

    key = jax.random.PRNGKey(0)
    kz, kp = jax.random.split(key)
    z = jax.random.normal(kz, (B, h_dim6), jnp.float32)
    params = make_params(kp, [h_dim6, h_dim5, h_dim4, h_dim3, h_dim2, h_dim1, x_dim])

    pparams = pad_params(params)                 # pad/cast once, reuse every forward
    out = generator_forward(z, pparams, x_dim)
    out = jax.block_until_ready(out)
    assert out.shape == (B, x_dim)

    # Exact-path check (same bf16 operand / f32 accumulate math as the kernel).
    ref_bf16 = reference_forward_bf16(z, params)
    assert jnp.allclose(out, ref_bf16, atol=2e-3, rtol=2e-3), "mismatch vs bf16 reference"

    # Semantic check vs full-f32 PyTorch-equivalent forward (loose: bf16 rounding).
    ref_f32 = reference_forward_f32(z, params)
    assert jnp.allclose(out, ref_f32, atol=1e-1, rtol=1e-1), "mismatch vs f32 reference"

    print("KERNEL_OK")
</pallas_src>

<mosaic_0001>
module attributes {stable_mosaic.version = 11 : i64} {
  func.func @generator_kernel(%arg0: i32, %arg1: memref<8x128xbf16, #tpu.memory_space<vmem>>, %arg2: memref<128x128xbf16, #tpu.memory_space<vmem>>, %arg3: memref<1x128xf32, #tpu.memory_space<vmem>>, %arg4: memref<128x128xbf16, #tpu.memory_space<vmem>>, %arg5: memref<1x128xf32, #tpu.memory_space<vmem>>, %arg6: memref<128x128xbf16, #tpu.memory_space<vmem>>, %arg7: memref<1x128xf32, #tpu.memory_space<vmem>>, %arg8: memref<128x128xbf16, #tpu.memory_space<vmem>>, %arg9: memref<1x128xf32, #tpu.memory_space<vmem>>, %arg10: memref<128x128xbf16, #tpu.memory_space<vmem>>, %arg11: memref<1x128xf32, #tpu.memory_space<vmem>>, %arg12: memref<128x256xbf16, #tpu.memory_space<vmem>>, %arg13: memref<1x256xf32, #tpu.memory_space<vmem>>, %arg14: memref<8x256xf32, #tpu.memory_space<vmem>>) attributes {dimension_semantics = [#tpu.dimension_semantics<parallel>], iteration_bounds = array<i64: 1>, scalar_prefetch = 0 : i64, scratch_operands = 0 : i64, tpu.core_type = #tpu.core_type<tc>, window_params = [{transform_indices = @transform_0, window_bounds = array<i64: 8, 128>}, {pipeline_mode = #tpu.pipeline_mode<synchronous>, transform_indices = @transform_1, window_bounds = array<i64: 128, 128>}, {pipeline_mode = #tpu.pipeline_mode<synchronous>, transform_indices = @transform_2, window_bounds = array<i64: 1, 128>}, {pipeline_mode = #tpu.pipeline_mode<synchronous>, transform_indices = @transform_3, window_bounds = array<i64: 128, 128>}, {pipeline_mode = #tpu.pipeline_mode<synchronous>, transform_indices = @transform_4, window_bounds = array<i64: 1, 128>}, {pipeline_mode = #tpu.pipeline_mode<synchronous>, transform_indices = @transform_5, window_bounds = array<i64: 128, 128>}, {pipeline_mode = #tpu.pipeline_mode<synchronous>, transform_indices = @transform_6, window_bounds = array<i64: 1, 128>}, {pipeline_mode = #tpu.pipeline_mode<synchronous>, transform_indices = @transform_7, window_bounds = array<i64: 128, 128>}, {pipeline_mode = #tpu.pipeline_mode<synchronous>, transform_indices = @transform_8, window_bounds = array<i64: 1, 128>}, {pipeline_mode = #tpu.pipeline_mode<synchronous>, transform_indices = @transform_9, window_bounds = array<i64: 128, 128>}, {pipeline_mode = #tpu.pipeline_mode<synchronous>, transform_indices = @transform_10, window_bounds = array<i64: 1, 128>}, {pipeline_mode = #tpu.pipeline_mode<synchronous>, transform_indices = @transform_11, window_bounds = array<i64: 128, 256>}, {pipeline_mode = #tpu.pipeline_mode<synchronous>, transform_indices = @transform_12, window_bounds = array<i64: 1, 256>}, {transform_indices = @transform_13, window_bounds = array<i64: 8, 256>}]} {
    %c0 = arith.constant 0 : index
    %c0_0 = arith.constant 0 : index
    %0 = vector.load %arg1[%c0, %c0_0] : memref<8x128xbf16, #tpu.memory_space<vmem>>, vector<8x128xbf16>
    %c0_1 = arith.constant 0 : index
    %c0_2 = arith.constant 0 : index
    %1 = vector.load %arg2[%c0_1, %c0_2] : memref<128x128xbf16, #tpu.memory_space<vmem>>, vector<128x128xbf16>
    %cst = arith.constant dense<0.000000e+00> : vector<8x128xf32>
    %2 = tpu.matmul %0, %1, %cst {dimension_numbers = #tpu.dot_dimension_numbers<[1], [0], [0], [1], [0, 0, 1, 1], [], []>} : vector<8x128xbf16>, vector<128x128xbf16>, vector<8x128xf32> -> vector<8x128xf32>
    %c0_3 = arith.constant 0 : index
    %c0_4 = arith.constant 0 : index
    %3 = vector.load %arg3[%c0_3, %c0_4] : memref<1x128xf32, #tpu.memory_space<vmem>>, vector<1x128xf32>
    %4 = vector.broadcast %3 : vector<1x128xf32> to vector<8x128xf32>
    %5 = arith.addf %2, %4 : vector<8x128xf32>
    %cst_5 = arith.constant 0.000000e+00 : f32
    %6 = vector.broadcast %cst_5 : f32 to vector<8x128xf32>
    %7 = arith.maximumf %5, %6 : vector<8x128xf32>
    %8 = arith.truncf %7 : vector<8x128xf32> to vector<8x128xbf16>
    %c0_6 = arith.constant 0 : index
    %c0_7 = arith.constant 0 : index
    %9 = vector.load %arg4[%c0_6, %c0_7] : memref<128x128xbf16, #tpu.memory_space<vmem>>, vector<128x128xbf16>
    %cst_8 = arith.constant dense<0.000000e+00> : vector<8x128xf32>
    %10 = tpu.matmul %8, %9, %cst_8 {dimension_numbers = #tpu.dot_dimension_numbers<[1], [0], [0], [1], [0, 0, 1, 1], [], []>} : vector<8x128xbf16>, vector<128x128xbf16>, vector<8x128xf32> -> vector<8x128xf32>
    %c0_9 = arith.constant 0 : index
    %c0_10 = arith.constant 0 : index
    %11 = vector.load %arg5[%c0_9, %c0_10] : memref<1x128xf32, #tpu.memory_space<vmem>>, vector<1x128xf32>
    %12 = vector.broadcast %11 : vector<1x128xf32> to vector<8x128xf32>
    %13 = arith.addf %10, %12 : vector<8x128xf32>
    %cst_11 = arith.constant 0.000000e+00 : f32
    %14 = vector.broadcast %cst_11 : f32 to vector<8x128xf32>
    %15 = arith.maximumf %13, %14 : vector<8x128xf32>
    %16 = arith.truncf %15 : vector<8x128xf32> to vector<8x128xbf16>
    %c0_12 = arith.constant 0 : index
    %c0_13 = arith.constant 0 : index
    %17 = vector.load %arg6[%c0_12, %c0_13] : memref<128x128xbf16, #tpu.memory_space<vmem>>, vector<128x128xbf16>
    %cst_14 = arith.constant dense<0.000000e+00> : vector<8x128xf32>
    %18 = tpu.matmul %16, %17, %cst_14 {dimension_numbers = #tpu.dot_dimension_numbers<[1], [0], [0], [1], [0, 0, 1, 1], [], []>} : vector<8x128xbf16>, vector<128x128xbf16>, vector<8x128xf32> -> vector<8x128xf32>
    %c0_15 = arith.constant 0 : index
    %c0_16 = arith.constant 0 : index
    %19 = vector.load %arg7[%c0_15, %c0_16] : memref<1x128xf32, #tpu.memory_space<vmem>>, vector<1x128xf32>
    %20 = vector.broadcast %19 : vector<1x128xf32> to vector<8x128xf32>
    %21 = arith.addf %18, %20 : vector<8x128xf32>
    %cst_17 = arith.constant 0.000000e+00 : f32
    %22 = vector.broadcast %cst_17 : f32 to vector<8x128xf32>
    %23 = arith.maximumf %21, %22 : vector<8x128xf32>
    %24 = arith.truncf %23 : vector<8x128xf32> to vector<8x128xbf16>
    %c0_18 = arith.constant 0 : index
    %c0_19 = arith.constant 0 : index
    %25 = vector.load %arg8[%c0_18, %c0_19] : memref<128x128xbf16, #tpu.memory_space<vmem>>, vector<128x128xbf16>
    %cst_20 = arith.constant dense<0.000000e+00> : vector<8x128xf32>
    %26 = tpu.matmul %24, %25, %cst_20 {dimension_numbers = #tpu.dot_dimension_numbers<[1], [0], [0], [1], [0, 0, 1, 1], [], []>} : vector<8x128xbf16>, vector<128x128xbf16>, vector<8x128xf32> -> vector<8x128xf32>
    %c0_21 = arith.constant 0 : index
    %c0_22 = arith.constant 0 : index
    %27 = vector.load %arg9[%c0_21, %c0_22] : memref<1x128xf32, #tpu.memory_space<vmem>>, vector<1x128xf32>
    %28 = vector.broadcast %27 : vector<1x128xf32> to vector<8x128xf32>
    %29 = arith.addf %26, %28 : vector<8x128xf32>
    %cst_23 = arith.constant 0.000000e+00 : f32
    %30 = vector.broadcast %cst_23 : f32 to vector<8x128xf32>
    %31 = arith.maximumf %29, %30 : vector<8x128xf32>
    %32 = arith.truncf %31 : vector<8x128xf32> to vector<8x128xbf16>
    %c0_24 = arith.constant 0 : index
    %c0_25 = arith.constant 0 : index
    %33 = vector.load %arg10[%c0_24, %c0_25] : memref<128x128xbf16, #tpu.memory_space<vmem>>, vector<128x128xbf16>
    %cst_26 = arith.constant dense<0.000000e+00> : vector<8x128xf32>
    %34 = tpu.matmul %32, %33, %cst_26 {dimension_numbers = #tpu.dot_dimension_numbers<[1], [0], [0], [1], [0, 0, 1, 1], [], []>} : vector<8x128xbf16>, vector<128x128xbf16>, vector<8x128xf32> -> vector<8x128xf32>
    %c0_27 = arith.constant 0 : index
    %c0_28 = arith.constant 0 : index
    %35 = vector.load %arg11[%c0_27, %c0_28] : memref<1x128xf32, #tpu.memory_space<vmem>>, vector<1x128xf32>
    %36 = vector.broadcast %35 : vector<1x128xf32> to vector<8x128xf32>
    %37 = arith.addf %34, %36 : vector<8x128xf32>
    %cst_29 = arith.constant 0.000000e+00 : f32
    %38 = vector.broadcast %cst_29 : f32 to vector<8x128xf32>
    %39 = arith.maximumf %37, %38 : vector<8x128xf32>
    %40 = arith.truncf %39 : vector<8x128xf32> to vector<8x128xbf16>
    %c0_30 = arith.constant 0 : index
    %c0_31 = arith.constant 0 : index
    %41 = vector.load %arg12[%c0_30, %c0_31] : memref<128x256xbf16, #tpu.memory_space<vmem>>, vector<128x256xbf16>
    %cst_32 = arith.constant dense<0.000000e+00> : vector<8x256xf32>
    %42 = tpu.matmul %40, %41, %cst_32 {dimension_numbers = #tpu.dot_dimension_numbers<[1], [0], [0], [1], [0, 0, 1, 1], [], []>} : vector<8x128xbf16>, vector<128x256xbf16>, vector<8x256xf32> -> vector<8x256xf32>
    %c0_33 = arith.constant 0 : index
    %c0_34 = arith.constant 0 : index
    %43 = vector.load %arg13[%c0_33, %c0_34] : memref<1x256xf32, #tpu.memory_space<vmem>>, vector<1x256xf32>
    %44 = vector.broadcast %43 : vector<1x256xf32> to vector<8x256xf32>
    %45 = arith.addf %42, %44 : vector<8x256xf32>
    %c0_35 = arith.constant 0 : index
    %c0_36 = arith.constant 0 : index
    %46 = vector.load %arg14[%c0_35, %c0_36] : memref<8x256xf32, #tpu.memory_space<vmem>>, vector<8x256xf32>
    tpu.vector_store %arg14[%c0_35, %c0_36], %45 {strides = array<i32>} : memref<8x256xf32, #tpu.memory_space<vmem>>, vector<8x256xf32>,
    return
  }
  func.func @transform_0(%arg0: i32) -> (i32, i32) {
    %c0_i32 = arith.constant 0 : i32
    %c0_i32_0 = arith.constant 0 : i32
    return %arg0, %c0_i32 : i32, i32
  }
  func.func @transform_1(%arg0: i32) -> (i32, i32) {
    %c0_i32 = arith.constant 0 : i32
    %c0_i32_0 = arith.constant 0 : i32
    %c0_i32_1 = arith.constant 0 : i32
    return %c0_i32, %c0_i32_0 : i32, i32
  }
  func.func @transform_2(%arg0: i32) -> (i32, i32) {
    %c0_i32 = arith.constant 0 : i32
    %c0_i32_0 = arith.constant 0 : i32
    %c0_i32_1 = arith.constant 0 : i32
    return %c0_i32, %c0_i32_0 : i32, i32
  }
  func.func @transform_3(%arg0: i32) -> (i32, i32) {
    %c0_i32 = arith.constant 0 : i32
    %c0_i32_0 = arith.constant 0 : i32
    %c0_i32_1 = arith.constant 0 : i32
    return %c0_i32, %c0_i32_0 : i32, i32
  }
  func.func @transform_4(%arg0: i32) -> (i32, i32) {
    %c0_i32 = arith.constant 0 : i32
    %c0_i32_0 = arith.constant 0 : i32
    %c0_i32_1 = arith.constant 0 : i32
    return %c0_i32, %c0_i32_0 : i32, i32
  }
  func.func @transform_5(%arg0: i32) -> (i32, i32) {
    %c0_i32 = arith.constant 0 : i32
    %c0_i32_0 = arith.constant 0 : i32
    %c0_i32_1 = arith.constant 0 : i32
    return %c0_i32, %c0_i32_0 : i32, i32
  }
  func.func @transform_6(%arg0: i32) -> (i32, i32) {
    %c0_i32 = arith.constant 0 : i32
    %c0_i32_0 = arith.constant 0 : i32
    %c0_i32_1 = arith.constant 0 : i32
    return %c0_i32, %c0_i32_0 : i32, i32
  }
  func.func @transform_7(%arg0: i32) -> (i32, i32) {
    %c0_i32 = arith.constant 0 : i32
    %c0_i32_0 = arith.constant 0 : i32
    %c0_i32_1 = arith.constant 0 : i32
    return %c0_i32, %c0_i32_0 : i32, i32
  }
  func.func @transform_8(%arg0: i32) -> (i32, i32) {
    %c0_i32 = arith.constant 0 : i32
    %c0_i32_0 = arith.constant 0 : i32
    %c0_i32_1 = arith.constant 0 : i32
    return %c0_i32, %c0_i32_0 : i32, i32
  }
  func.func @transform_9(%arg0: i32) -> (i32, i32) {
    %c0_i32 = arith.constant 0 : i32
    %c0_i32_0 = arith.constant 0 : i32
    %c0_i32_1 = arith.constant 0 : i32
    return %c0_i32, %c0_i32_0 : i32, i32
  }
  func.func @transform_10(%arg0: i32) -> (i32, i32) {
    %c0_i32 = arith.constant 0 : i32
    %c0_i32_0 = arith.constant 0 : i32
    %c0_i32_1 = arith.constant 0 : i32
    return %c0_i32, %c0_i32_0 : i32, i32
  }
  func.func @transform_11(%arg0: i32) -> (i32, i32) {
    %c0_i32 = arith.constant 0 : i32
    %c0_i32_0 = arith.constant 0 : i32
    %c0_i32_1 = arith.constant 0 : i32
    return %c0_i32, %c0_i32_0 : i32, i32
  }
  func.func @transform_12(%arg0: i32) -> (i32, i32) {
    %c0_i32 = arith.constant 0 : i32
    %c0_i32_0 = arith.constant 0 : i32
    %c0_i32_1 = arith.constant 0 : i32
    return %c0_i32, %c0_i32_0 : i32, i32
  }
  func.func @transform_13(%arg0: i32) -> (i32, i32) {
    %c0_i32 = arith.constant 0 : i32
    %c0_i32_0 = arith.constant 0 : i32
    return %arg0, %c0_i32 : i32, i32
  }
}

</mosaic_0001>

<bundles_post_ra>
// kernel: _generator_pallas.1
= control target key start
LH: loop header
LB: loop body
LE: loop exit
PB: predicated region body
PF: predicated region fallthrough
CT: control target
= control target key end

     0   :  { %18 = vsyncpa [#allocation3], 0  ;;  %s1609_s0 = inlined_call_operand.hbm [shape: bf16[8,128], index: 0, kind: input, shape index: {}]   ;;  %s1610_s1 = inlined_call_operand.hbm [shape: bf16[128,128], index: 1, kind: input, shape index: {}]   ;;  %s1611_s2 = inlined_call_operand.vmem [shape: f32[1,128], index: 2, kind: input, shape index: {}]   ;;  %s1612_s3 = inlined_call_operand.hbm [shape: bf16[128,128], index: 3, kind: input, shape index: {}]   ;;  %s1613_s4 = inlined_call_operand.vmem [shape: f32[1,128], index: 4, kind: input, shape index: {}]   ;;  %s1614_s5 = inlined_call_operand.hbm [shape: bf16[128,128], index: 5, kind: input, shape index: {}]   ;;  %s1615_s6 = inlined_call_operand.vmem [shape: f32[1,128], index: 6, kind: input, shape index: {}]   ;;  %s1616_s7 = inlined_call_operand.hbm [shape: bf16[128,128], index: 7, kind: input, shape index: {}]   ;;  %s1617_s8 = inlined_call_operand.vmem [shape: f32[1,128], index: 8, kind: input, shape index: {}]   ;;  %s1618_s9 = inlined_call_operand.hbm [shape: bf16[128,128], index: 9, kind: input, shape index: {}]   ;;  %s1619_s10 = inlined_call_operand.vmem [shape: f32[1,128], index: 10, kind: input, shape index: {}]   ;;  %s1620_s11 = inlined_call_operand.hbm [shape: bf16[128,256], index: 11, kind: input, shape index: {}]   ;;  %s1621_s12 = inlined_call_operand.vmem [shape: f32[1,256], index: 12, kind: input, shape index: {}]   ;;  %s1622_s13 = inlined_call_operand.hbm [shape: f32[8,256], index: 13, kind: output, shape index: {}]  }
   0x1   :  { %19 = vsyncpa [#allocation6], 0 }
   0x2   :  { %20 = vsyncpa [#allocation9], 0 }
   0x3   :  { %21 = vsyncpa [#allocation12], 0 }
   0x4   :  { %22 = vsyncpa [#allocation4], 0  ;;  %s1345_s25 = smov [#allocation5]   ;;  %s1159_s29 = scalar_lea.hbm %s1610_s1, 1024 }
   0x5   :  { %s38_s26 = sshll.u32 %s1345_s25, 4  ;;  %p1160_p0 = scmp.ne.s32.totalorder %s1610_s1, %s1159_s29  ;;  %s39_s26 = int_to_ptr.vmem [resolvable:$true] %s38_s26 }
   0x6   :  { %p1163_p1 = scmp.lt.u32.totalorder %s1159_s29, %s1610_s1 }
   0x8   :  { %p1165_p2 = pnand %p1163_p1, %p1160_p0 }
   0xa   :  { %1168 = shalt.err (!%p1165_p2)
}
   0xb   :  { %s1169_s17 = scalar_lea.vmem %s39_s26, 1024  ;;  %p1174_p4 = scmp.lt.s32.totalorder %s39_s26, %s39_s26 }
   0xc   :  { %p1170_p3 = scmp.ne.s32.totalorder %s39_s26, %s1169_s17  ;;  %p1175_p5 = scmp.lt.s32.totalorder %s1169_s17, %s1169_s17 }
   0xe   :  { %p1176_p6 = por %p1175_p5, %p1174_p4 }
  0x10   :  { %p1177_p7 = pnand %p1176_p6, %p1170_p3 }
  0x12   :  { %1180 = shalt.err (!%p1177_p7)
}
  0x13   :  { %s1346_s18 = smov 64   ;;  %s1347_s19 = smov 4  }
  0x14   :  { %44 = dma.hbm_to_vmem [thread:$0]  %s1610_s1, 1024, %s39_s26, [#allocation6], %s1346_s18, %s1346_s18, %s1347_s19  }
  0x15   :  { %s1348_s22 = smov [#allocation8]   ;;  %s1349_s24 = smov [#allocation11]  }
  0x16   :  { %s66_s23 = sshll.u32 %s1348_s22, 4  ;;  %s94_s25 = sshll.u32 %s1349_s24, 4  ;;  %s67_s23 = int_to_ptr.vmem [resolvable:$true] %s66_s23  ;;  %s95_s25 = int_to_ptr.vmem [resolvable:$true] %s94_s25 }
  0x17   :  { %s1181_s29 = scalar_lea.hbm %s1614_s5, 1024 }
  0x18   :  { %p1182_p8 = scmp.ne.s32.totalorder %s1614_s5, %s1181_s29  ;;  %p1185_p9 = scmp.lt.u32.totalorder %s1181_s29, %s1614_s5 }
  0x1a   :  { %p1187_p10 = pnand %p1185_p9, %p1182_p8 }
  0x1c   :  { %1190 = shalt.err (!%p1187_p10)
}
  0x1d   :  { %s1191_s1 = scalar_lea.vmem %s67_s23, 1024  ;;  %p1196_p12 = scmp.lt.s32.totalorder %s67_s23, %s67_s23 }
  0x1e   :  { %p1192_p11 = scmp.ne.s32.totalorder %s67_s23, %s1191_s1  ;;  %p1197_p13 = scmp.lt.s32.totalorder %s1191_s1, %s1191_s1 }
  0x20   :  { %p1198_p0 = por %p1197_p13, %p1196_p12 }
  0x22   :  { %p1199_p1 = pnand %p1198_p0, %p1192_p11 }
  0x24   :  { %1202 = shalt.err (!%p1199_p1)
}
  0x25   :  { %72 = dma.hbm_to_vmem [thread:$0]  %s1614_s5, 1024, %s67_s23, [#allocation9], %s1346_s18, %s1346_s18, %s1347_s19  }
  0x26   :  { %s1203_s22 = scalar_lea.hbm %s1618_s9, 1024 }
  0x27   :  { %p1204_p2 = scmp.ne.s32.totalorder %s1618_s9, %s1203_s22  ;;  %p1207_p3 = scmp.lt.u32.totalorder %s1203_s22, %s1618_s9 }
  0x29   :  { %p1209_p4 = pnand %p1207_p3, %p1204_p2 }
  0x2b   :  { %1212 = shalt.err (!%p1209_p4)
}
  0x2c   :  { %s1213_s30 = scalar_lea.vmem %s95_s25, 1024  ;;  %p1218_p6 = scmp.lt.s32.totalorder %s95_s25, %s95_s25 }
  0x2d   :  { %p1214_p5 = scmp.ne.s32.totalorder %s95_s25, %s1213_s30  ;;  %p1219_p7 = scmp.lt.s32.totalorder %s1213_s30, %s1213_s30 }
  0x2f   :  { %p1220_p8 = por %p1219_p7, %p1218_p6 }
  0x31   :  { %p1221_p9 = pnand %p1220_p8, %p1214_p5 }
  0x33   :  { %1224 = shalt.err (!%p1221_p9)
}
  0x34   :  { %100 = dma.hbm_to_vmem [thread:$0]  %s1618_s9, 1024, %s95_s25, [#allocation12], %s1346_s18, %s1346_s18, %s1347_s19  }
  0x35   :  { %s1350_s14 = smov [#allocation2]   ;;  %s1351_s16 = smov [#allocation7]  }
  0x36   :  { %s29_s15 = sshll.u32 %s1350_s14, 4  ;;  %s52_s1 = sshll.u32 %s1351_s16, 4  ;;  %s30_s15 = int_to_ptr.vmem [resolvable:$true] %s29_s15  ;;  %s53_s1 = int_to_ptr.vmem [resolvable:$true] %s52_s1 }
  0x37   :  { %s1225_s20 = scalar_lea.hbm %s1609_s0, 64 }
  0x38   :  { %p1226_p10 = scmp.ne.s32.totalorder %s1609_s0, %s1225_s20  ;;  %p1229_p11 = scmp.lt.u32.totalorder %s1225_s20, %s1609_s0 }
  0x3a   :  { %p1231_p12 = pnand %p1229_p11, %p1226_p10 }
  0x3c   :  { %1234 = shalt.err (!%p1231_p12)
}
  0x3d   :  { %s1235_s9 = scalar_lea.vmem %s30_s15, 64  ;;  %p1240_p0 = scmp.lt.s32.totalorder %s30_s15, %s30_s15 }
  0x3e   :  { %p1236_p13 = scmp.ne.s32.totalorder %s30_s15, %s1235_s9  ;;  %p1241_p1 = scmp.lt.s32.totalorder %s1235_s9, %s1235_s9 }
  0x40   :  { %p1242_p2 = por %p1241_p1, %p1240_p0 }
  0x42   :  { %p1243_p3 = pnand %p1242_p2, %p1236_p13 }
  0x44   :  { %1246 = shalt.err (!%p1243_p3)
}
  0x45   :  { %32 = dma.hbm_to_vmem [thread:$0]  %s1609_s0, 64, %s30_s15, [#allocation3]  }
  0x46   :  { %s1247_s5 = scalar_lea.hbm %s1612_s3, 1024 }
  0x47   :  { %p1248_p4 = scmp.ne.s32.totalorder %s1612_s3, %s1247_s5  ;;  %p1251_p5 = scmp.lt.u32.totalorder %s1247_s5, %s1612_s3 }
  0x49   :  { %p1253_p6 = pnand %p1251_p5, %p1248_p4 }
  0x4b   :  { %1256 = shalt.err (!%p1253_p6)
}
  0x4c   :  { %s1257_s17 = scalar_lea.vmem %s53_s1, 1024  ;;  %p1262_p8 = scmp.lt.s32.totalorder %s53_s1, %s53_s1 }
  0x4d   :  { %p1258_p7 = scmp.ne.s32.totalorder %s53_s1, %s1257_s17  ;;  %p1263_p9 = scmp.lt.s32.totalorder %s1257_s17, %s1257_s17 }
  0x4f   :  { %p1264_p10 = por %p1263_p9, %p1262_p8 }
  0x51   :  { %p1265_p11 = pnand %p1264_p10, %p1258_p7 }
  0x53   :  { %1268 = shalt.err (!%p1265_p11)
}
  0x54   :  { %58 = dma.hbm_to_vmem [thread:$0]  %s1612_s3, 1024, %s53_s1, [#allocation6], %s1346_s18, %s1346_s18, %s1347_s19  }
  0x55   :  { %s1352_s20 = smov [#allocation10]   ;;  %s1353_s22 = smov [#allocation13]  }
  0x56   :  { %s80_s21 = sshll.u32 %s1352_s20, 4  ;;  %s108_s24 = sshll.u32 %s1353_s22, 4  ;;  %s81_s21 = int_to_ptr.vmem [resolvable:$true] %s80_s21  ;;  %s109_s24 = int_to_ptr.vmem [resolvable:$true] %s108_s24 }
  0x57   :  { %s1269_s25 = scalar_lea.hbm %s1616_s7, 1024 }
  0x58   :  { %p1270_p12 = scmp.ne.s32.totalorder %s1616_s7, %s1269_s25  ;;  %p1273_p13 = scmp.lt.u32.totalorder %s1269_s25, %s1616_s7 }
  0x5a   :  { %p1275_p0 = pnand %p1273_p13, %p1270_p12 }
  0x5c   :  { %1278 = shalt.err (!%p1275_p0)
}
  0x5d   :  { %s1279_s3 = scalar_lea.vmem %s81_s21, 1024  ;;  %p1284_p2 = scmp.lt.s32.totalorder %s81_s21, %s81_s21 }
  0x5e   :  { %p1280_p1 = scmp.ne.s32.totalorder %s81_s21, %s1279_s3  ;;  %p1285_p3 = scmp.lt.s32.totalorder %s1279_s3, %s1279_s3 }
  0x60   :  { %p1286_p4 = por %p1285_p3, %p1284_p2 }
  0x62   :  { %p1287_p5 = pnand %p1286_p4, %p1280_p1 }
  0x64   :  { %1290 = shalt.err (!%p1287_p5)
}
  0x65   :  { %86 = dma.hbm_to_vmem [thread:$0]  %s1616_s7, 1024, %s81_s21, [#allocation9], %s1346_s18, %s1346_s18, %s1347_s19  }
  0x66   :  { %s1291_s26 = scalar_lea.hbm %s1620_s11, 2048 }
  0x67   :  { %p1292_p6 = scmp.ne.s32.totalorder %s1620_s11, %s1291_s26  ;;  %p1295_p7 = scmp.lt.u32.totalorder %s1291_s26, %s1620_s11 }
  0x69   :  { %p1297_p8 = pnand %p1295_p7, %p1292_p6 }
  0x6b   :  { %1300 = shalt.err (!%p1297_p8)
}
  0x6c   :  { %s1301_s22 = scalar_lea.vmem %s109_s24, 2048  ;;  %p1306_p10 = scmp.lt.s32.totalorder %s109_s24, %s109_s24 }
  0x6d   :  { %p1302_p9 = scmp.ne.s32.totalorder %s109_s24, %s1301_s22  ;;  %p1307_p11 = scmp.lt.s32.totalorder %s1301_s22, %s1301_s22 }
  0x6f   :  { %p1308_p12 = por %p1307_p11, %p1306_p10 }
  0x71   :  { %p1309_p13 = pnand %p1308_p12, %p1302_p9 }
  0x73   :  { %1312 = shalt.err (!%p1309_p13)
}
  0x74   :  { %s1354_s7 = smov 128   ;;  %s1355_s18 = smov 8  }
  0x75   :  { %114 = dma.hbm_to_vmem [thread:$0]  %s1620_s11, 2048, %s109_s24, [#allocation12], %s1354_s7, %s1354_s7, %s1355_s18  }
  0x76   :  { %1335 = dma.done.wait [#allocation3], 64  }
  0x77   :  { %1336 = vsyncadd [#allocation3], 4294967232 }
  0x78   :  { %1337 = dma.done.wait [#allocation6], 2048  }
  0x79   :  { %1338 = vsyncadd [#allocation6], 4294965248 }
  0x7a   :  { %1339 = dma.done.wait [#allocation9], 2048  }
  0x7b   :  { %1340 = vsyncadd [#allocation9], 4294965248 }
  0x7c   :  { %1341 = dma.done.wait [#allocation12], 3072  }
  0x7d   :  { %1342 = vsyncadd [#allocation12], 4294964224  ;;  %v1356_v0 = vmov 0.0   ;;  %vm1357_vm0 = vmmov 0   ;;  %v1095_v1 = vld [vmem:[#allocation5] sm:$0xff]   ;;  %v1096_v2 = vld [vmem:[#allocation5 + $0x8] sm:$0xff]  }
  0x7e   :  { %980 = vmatprep.subr.bf16.mxu0 %v1356_v0  ;;  %996 = vmatprep.mubr.msk.bf16.mxu0 %vm1357_vm0, %v1356_v0  ;;  %v1097_v3 = vld [vmem:[#allocation5 + $0x10] sm:$0xff]   ;;  %v1103_v4 = vld [vmem:[#allocation7] sm:$0xff]   ;;  %v1098_v5 = vld [vmem:[#allocation5 + $0x18] sm:$0xff]   ;;  %s1359_s5 = smov [#allocation14]  }
  0x7f   :  { %1000 = vmatprep.subr.bf16.mxu1 %v1356_v0  ;;  %1016 = vmatprep.mubr.msk.bf16.mxu1 %vm1357_vm0, %v1356_v0  ;;  %v1104_v6 = vld [vmem:[#allocation7 + $0x8] sm:$0xff]   ;;  %v1099_v7 = vld [vmem:[#allocation5 + $0x20] sm:$0xff]   ;;  %v1105_v8 = vld [vmem:[#allocation7 + $0x10] sm:$0xff]  }
  0x80   :  { %981 = vmatpush3.bf16.msra.mxu0 %v1095_v1  ;;  %1001 = vmatpush3.bf16.msra.mxu1 %v1103_v4  ;;  %v1100_v9 = vld [vmem:[#allocation5 + $0x28] sm:$0xff]   ;;  %v1106_v10 = vld [vmem:[#allocation7 + $0x18] sm:$0xff]   ;;  %v1101_v11 = vld [vmem:[#allocation5 + $0x30] sm:$0xff]  }
  0x81   :  { %982 = vmatprep.subr.bf16.mxu0 %v1356_v0  ;;  %1002 = vmatprep.subr.bf16.mxu1 %v1356_v0  ;;  %v1107_v12 = vld [vmem:[#allocation7 + $0x20] sm:$0xff]   ;;  %v1102_v13 = vld [vmem:[#allocation5 + $0x38] sm:$0xff]   ;;  %v1108_v14 = vld [vmem:[#allocation7 + $0x28] sm:$0xff]  }
  0x82   :  { %v139_v15 = vld [vmem:[#allocation2] sm:$0xf]  ;;  %v1109_v16 = vld [vmem:[#allocation7 + $0x30] sm:$0xff]   ;;  %v1111_v18 = vld [vmem:[#allocation8] sm:$0xff]  }
  0x83   :  { %v1110_v17 = vld [vmem:[#allocation7 + $0x38] sm:$0xff]   ;;  %v1112_v19 = vld [vmem:[#allocation8 + $0x8] sm:$0xff]   ;;  %v1113_v20 = vld [vmem:[#allocation8 + $0x10] sm:$0xff]  }
  0x84   :  { %983 = vmatpush3.bf16.msra.mxu0 %v1096_v2  ;;  %1003 = vmatpush3.bf16.msra.mxu1 %v1104_v6  ;;  %v1114_v21 = vld [vmem:[#allocation8 + $0x18] sm:$0xff]   ;;  %v1115_v22 = vld [vmem:[#allocation8 + $0x20] sm:$0xff]   ;;  %v1116_v23 = vld [vmem:[#allocation8 + $0x28] sm:$0xff]  }
  0x85   :  { %984 = vmatprep.subr.bf16.mxu0 %v1356_v0  ;;  %1004 = vmatprep.subr.bf16.mxu1 %v1356_v0  ;;  %v874_v24 = vld [vmem:[%s1611_s2] ss:$0 sm:$0xff]  ;;  %v1117_v32 = vld [vmem:[#allocation8 + $0x30] sm:$0xff]   ;;  %v1119_v34 = vld [vmem:[#allocation10] sm:$0xff]  }
  0x86   :  { %v1118_v33 = vld [vmem:[#allocation8 + $0x38] sm:$0xff]   ;;  %v1120_v35 = vld [vmem:[#allocation10 + $0x8] sm:$0xff]   ;;  %v1121_v36 = vld [vmem:[#allocation10 + $0x10] sm:$0xff]  }
  0x87   :  { %v1122_v37 = vld [vmem:[#allocation10 + $0x18] sm:$0xff]   ;;  %v1123_v38 = vld [vmem:[#allocation10 + $0x20] sm:$0xff]   ;;  %v1124_v39 = vld [vmem:[#allocation10 + $0x28] sm:$0xff]  }
  0x88   :  { %985 = vmatpush3.bf16.msra.mxu0 %v1097_v3  ;;  %1005 = vmatpush3.bf16.msra.mxu1 %v1105_v8  ;;  %v883_v40 = vld [vmem:[%s1613_s4] ss:$0 sm:$0xff]  ;;  %v1125_v48 = vld [vmem:[#allocation10 + $0x30] sm:$0xff]   ;;  %v1127_v50 = vld [vmem:[#allocation11] sm:$0xff]  }
  0x89   :  { %986 = vmatprep.subr.bf16.mxu0 %v1356_v0  ;;  %1006 = vmatprep.subr.bf16.mxu1 %v1356_v0  ;;  %v1126_v49 = vld [vmem:[#allocation10 + $0x38] sm:$0xff]   ;;  %v1128_v51 = vld [vmem:[#allocation11 + $0x8] sm:$0xff]   ;;  %v1129_v52 = vld [vmem:[#allocation11 + $0x10] sm:$0xff]  }
  0x8a   :  { %v1130_v53 = vld [vmem:[#allocation11 + $0x18] sm:$0xff]   ;;  %v1131_v54 = vld [vmem:[#allocation11 + $0x20] sm:$0xff]   ;;  %v1132_v55 = vld [vmem:[#allocation11 + $0x28] sm:$0xff]  }
  0x8b   :  { %v892_v56 = vld [vmem:[%s1615_s6] ss:$0 sm:$0xff]  ;;  %v1133_v1 = vld [vmem:[#allocation11 + $0x30] sm:$0xff]   ;;  %v1135_v3 = vld [vmem:[#allocation13] ss:$8 sps:$4 sm:$0xff]  }
  0x8c   :  { %987 = vmatpush3.bf16.msra.mxu0 %v1098_v5  ;;  %1007 = vmatpush3.bf16.msra.mxu1 %v1106_v10  ;;  %v1134_v2 = vld [vmem:[#allocation11 + $0x38] sm:$0xff]   ;;  %v1137_v4 = vld [vmem:[#allocation13 + $0x4] ss:$8 sps:$4 sm:$0xff]   ;;  %v1141_v8 = vld [vmem:[#allocation13 + $0x20] ss:$8 sps:$4 sm:$0xff]  }
  0x8d   :  { %988 = vmatprep.subr.bf16.mxu0 %v1356_v0  ;;  %1008 = vmatprep.subr.bf16.mxu1 %v1356_v0  ;;  %v1140_v5 = vld [vmem:[#allocation13 + $0x14] ss:$8 sps:$4 sm:$0xff]   ;;  %v1138_v6 = vld [vmem:[#allocation13 + $0x10] ss:$8 sps:$4 sm:$0xff]  }
  0x8e   :  { %v1144_v10 = vld [vmem:[#allocation13 + $0x30] ss:$8 sps:$4 sm:$0xff]  }
  0x90   :  { %989 = vmatpush3.bf16.msra.mxu0 %v1099_v7  ;;  %1009 = vmatpush3.bf16.msra.mxu1 %v1107_v12  ;;  %v1143_v7 = vld [vmem:[#allocation13 + $0x24] ss:$8 sps:$4 sm:$0xff]   ;;  %v1152_v12 = vld [vmem:[#allocation13 + $0x54] ss:$8 sps:$4 sm:$0xff]  }
  0x91   :  { %990 = vmatprep.subr.bf16.mxu0 %v1356_v0  ;;  %1010 = vmatprep.subr.bf16.mxu1 %v1356_v0 }
  0x94   :  { %991 = vmatpush3.bf16.msra.mxu0 %v1100_v9  ;;  %1011 = vmatpush3.bf16.msra.mxu1 %v1108_v14  ;;  %v1146_v9 = vld [vmem:[#allocation13 + $0x34] ss:$8 sps:$4 sm:$0xff]   ;;  %v1155_v14 = vld [vmem:[#allocation13 + $0x64] ss:$8 sps:$4 sm:$0xff]  }
  0x95   :  { %992 = vmatprep.subr.bf16.mxu0 %v1356_v0  ;;  %1012 = vmatprep.subr.bf16.mxu1 %v1356_v0 }
  0x98   :  { %993 = vmatpush3.bf16.msra.mxu0 %v1101_v11  ;;  %1013 = vmatpush3.bf16.msra.mxu1 %v1109_v16  ;;  %v1149_v11 = vld [vmem:[#allocation13 + $0x44] ss:$8 sps:$4 sm:$0xff]   ;;  %v901_v16 = vld [vmem:[%s1617_s8] ss:$0 sm:$0xff] }
  0x99   :  { %994 = vmatprep.subr.bf16.mxu0 %v1356_v0  ;;  %1014 = vmatprep.subr.bf16.mxu1 %v1356_v0 }
  0x9c   :  { %995 = vmatpush3.bf16.msra.mxu0 %v1102_v13  ;;  %1015 = vmatpush3.bf16.msra.mxu1 %v1110_v17  ;;  %v1150_v13 = vld [vmem:[#allocation13 + $0x50] ss:$8 sps:$4 sm:$0xff]  }
  0x9d   :  { %1020 = vmatprep.subr.bf16.mxu0 %v1356_v0  ;;  %1040 = vmatprep.subr.bf16.mxu1 %v1356_v0 }
  0x9f   :  { %997 = vmatmul.mubr.bf16.vlgmr.msra.gmra.mrb[0].mxu0 %v139_v15  ;;  %v1153_v15 = vld [vmem:[#allocation13 + $0x60] ss:$8 sps:$4 sm:$0xff]  }
  0xa0   :  { %1036 = vmatprep.mubr.msk.bf16.mxu0 %vm1357_vm0, %v1356_v0  ;;  %1021 = vmatpush3.bf16.msra.mxu0 %v1111_v18 }
  0xa1   :  { %1022 = vmatprep.subr.bf16.mxu0 %v1356_v0 }
  0xa4   :  { %1023 = vmatpush3.bf16.msra.mxu0 %v1112_v19 }
  0xa5   :  { %1024 = vmatprep.subr.bf16.mxu0 %v1356_v0 }
  0xa8   :  { %1025 = vmatpush3.bf16.msra.mxu0 %v1113_v20 }
  0xa9   :  { %1026 = vmatprep.subr.bf16.mxu0 %v1356_v0 }
  0xac   :  { %1027 = vmatpush3.bf16.msra.mxu0 %v1114_v21 }
  0xad   :  { %1028 = vmatprep.subr.bf16.mxu0 %v1356_v0 }
  0xb0   :  { %1029 = vmatpush3.bf16.msra.mxu0 %v1115_v22 }
  0xb1   :  { %1030 = vmatprep.subr.bf16.mxu0 %v1356_v0 }
  0xb4   :  { %1031 = vmatpush3.bf16.msra.mxu0 %v1116_v23 }
  0xb5   :  { %1032 = vmatprep.subr.bf16.mxu0 %v1356_v0 }
  0xb8   :  { %1033 = vmatpush3.bf16.msra.mxu0 %v1117_v32 }
  0xb9   :  { %1034 = vmatprep.subr.bf16.mxu0 %v1356_v0 }
  0xbc   :  { %1035 = vmatpush3.bf16.msra.mxu0 %v1118_v33 }
  0xbd   :  { %1060 = vmatprep.subr.bf16.mxu0 %v1356_v0 }
 0x172   :  { %v245_v25 = vpop.f32.mrb[0].mxu0 }
 0x173   :  { %v246_v26 = vadd.f32 %v874_v24, %v245_v25  ;;  %v998_v27 = vpop.f32.mrb[1].mxu0  ;;  %v1158_v24 = vld [vmem:[#allocation13 + $0x74] ss:$8 sps:$4 sm:$0xff]   ;;  %v1156_v25 = vld [vmem:[#allocation13 + $0x70] ss:$8 sps:$4 sm:$0xff]  }
 0x174   :  { %v248_v28 = vpop.f32.mrb[2].mxu0  ;;  %v910_v27 = vld [vmem:[%s1619_s10] ss:$0 sm:$0xff]  ;;  %s862_s10 = sshll.u32 %s1359_s5, 4  ;;  %s863_s10 = int_to_ptr.vmem [resolvable:$true] %s862_s10 }
 0x175   :  { %v251_v29 = vmax.f32 %v246_v26, 0.0  ;;  %v999_v30 = vpop.f32.mrb[3].mxu0  ;;  %v1358_v26 = vmov 0   ;;  %s1313_s3 = scalar_lea.vmem %s863_s10, 256  ;;  %p1318_p1 = scmp.lt.s32.totalorder %s863_s10, %s863_s10 }
 0x176   :  { %p1314_p0 = scmp.ne.s32.totalorder %s863_s10, %s1313_s3  ;;  %p1319_p2 = scmp.lt.s32.totalorder %s1313_s3, %s1313_s3 }
 0x177   :  { %v252_v31 = vpack.c.bf16 %v251_v29, %v251_v29 }
 0x178   :  { %p1320_p3 = por %p1319_p2, %p1318_p1 }
 0x179   :  { %1017 = vmatmul.mubr.bf16.vlgmr.msra.gmra.mrb[0].mxu1 %v252_v31 }
 0x17a   :  { %1056 = vmatprep.mubr.msk.bf16.mxu1 %vm1357_vm0, %v1356_v0  ;;  %1041 = vmatpush3.bf16.msra.mxu1 %v1119_v34  ;;  %p1321_p4 = pnand %p1320_p3, %p1314_p0 }
 0x17b   :  { %1042 = vmatprep.subr.bf16.mxu1 %v1356_v0 }
 0x17e   :  { %1043 = vmatpush3.bf16.msra.mxu1 %v1120_v35  ;;  %v723_v35 = vlaneseq }
 0x17f   :  { %1044 = vmatprep.subr.bf16.mxu1 %v1356_v0 }
 0x182   :  { %1045 = vmatpush3.bf16.msra.mxu1 %v1121_v36  ;;  %v724_v36 = vshrl.u32 %v723_v35, 7 }
 0x183   :  { %1046 = vmatprep.subr.bf16.mxu1 %v1356_v0 }
 0x186   :  { %1047 = vmatpush3.bf16.msra.mxu1 %v1122_v37  ;;  %v725_v37 = vsub.s32 0, %v724_v36 }
 0x187   :  { %1048 = vmatprep.subr.bf16.mxu1 %v1356_v0 }
 0x18a   :  { %1049 = vmatpush3.bf16.msra.mxu1 %v1123_v38  ;;  %v721_v38 = vld [vmem:[%s1621_s12] sm:$0x3] }
 0x18b   :  { %1050 = vmatprep.subr.bf16.mxu1 %v1356_v0 }
 0x18e   :  { %1051 = vmatpush3.bf16.msra.mxu1 %v1124_v39  ;;  %v729_v39 = vsub.s32 1, %v724_v36 }
 0x18f   :  { %1052 = vmatprep.subr.bf16.mxu1 %v1356_v0 }
 0x192   :  { %1053 = vmatpush3.bf16.msra.mxu1 %v1125_v48 }
 0x193   :  { %1054 = vmatprep.subr.bf16.mxu1 %v1356_v0 }
 0x196   :  { %1055 = vmatpush3.bf16.msra.mxu1 %v1126_v49 }
 0x197   :  { %813 = vmatprep.subr.bf16.mxu1 %v1137_v4 }
 0x24c   :  { %v358_v41 = vpop.f32.mrb[0].mxu1 }
 0x24d   :  { %v359_v42 = vadd.f32 %v883_v40, %v358_v41  ;;  %v1018_v43 = vpop.f32.mrb[1].mxu1  ;;  %v726_v40 = vrot.slane %v721_v38, %v725_v37  ;;  %v730_v41 = vrot.slane %v721_v38, %v729_v39 }
 0x24e   :  { %v361_v44 = vpop.f32.mrb[2].mxu1 }
 0x24f   :  { %v364_v45 = vmax.f32 %v359_v42, 0.0  ;;  %v1019_v46 = vpop.f32.mrb[3].mxu1 }
 0x251   :  { %v365_v47 = vpack.c.bf16 %v364_v45, %v364_v45 }
 0x253   :  { %1037 = vmatmul.mubr.bf16.vlgmr.msra.gmra.mrb[4].mxu0 %v365_v47 }
 0x254   :  { %1076 = vmatprep.mubr.msk.bf16.mxu0 %vm1357_vm0, %v1356_v0  ;;  %1061 = vmatpush3.bf16.msra.mxu0 %v1127_v50 }
 0x255   :  { %1062 = vmatprep.subr.bf16.mxu0 %v1356_v0 }
 0x258   :  { %1063 = vmatpush3.bf16.msra.mxu0 %v1128_v51 }
 0x259   :  { %1064 = vmatprep.subr.bf16.mxu0 %v1356_v0 }
 0x25c   :  { %1065 = vmatpush3.bf16.msra.mxu0 %v1129_v52 }
 0x25d   :  { %1066 = vmatprep.subr.bf16.mxu0 %v1356_v0 }
 0x260   :  { %1067 = vmatpush3.bf16.msra.mxu0 %v1130_v53 }
 0x261   :  { %1068 = vmatprep.subr.bf16.mxu0 %v1356_v0 }
 0x264   :  { %1069 = vmatpush3.bf16.msra.mxu0 %v1131_v54 }
 0x265   :  { %1070 = vmatprep.subr.bf16.mxu0 %v1356_v0 }
 0x268   :  { %1071 = vmatpush3.bf16.msra.mxu0 %v1132_v55 }
 0x269   :  { %1072 = vmatprep.subr.bf16.mxu0 %v1356_v0 }
 0x26c   :  { %1073 = vmatpush3.bf16.msra.mxu0 %v1133_v1 }
 0x26d   :  { %1074 = vmatprep.subr.bf16.mxu0 %v1356_v0  ;;  %v1147_v0 = vld [vmem:[#allocation13 + $0x40] ss:$8 sps:$4 sm:$0xff]  }
 0x270   :  { %1075 = vmatpush3.bf16.msra.mxu0 %v1134_v2 }
 0x326   :  { %v471_v57 = vpop.f32.mrb[4].mxu0 }
 0x327   :  { %v472_v58 = vadd.f32 %v892_v56, %v471_v57  ;;  %v1038_v59 = vpop.f32.mrb[5].mxu0 }
 0x328   :  { %v474_v60 = vpop.f32.mrb[6].mxu0 }
 0x329   :  { %v477_v61 = vmax.f32 %v472_v58, 0.0  ;;  %v1039_v62 = vpop.f32.mrb[7].mxu0 }
 0x32b   :  { %v478_v63 = vpack.c.bf16 %v477_v61, %v477_v61 }
 0x32d   :  { %1057 = vmatmul.mubr.bf16.vlgmr.msra.gmra.mrb[4].mxu1 %v478_v63 }
 0x32e   :  { %814 = vmatpush1.bf16.msra.mxu1 %v1135_v3  ;;  %845 = vmatprep.mubr.bf16.mxu1 %v1358_v26 }
 0x32f   :  { %815 = vmatprep.subr.bf16.mxu1 %v1140_v5 }
 0x332   :  { %816 = vmatpush1.bf16.msra.mxu1 %v1138_v6 }
 0x333   :  { %817 = vmatprep.subr.bf16.mxu1 %v1143_v7 }
 0x336   :  { %818 = vmatpush1.bf16.msra.mxu1 %v1141_v8 }
 0x337   :  { %819 = vmatprep.subr.bf16.mxu1 %v1146_v9 }
 0x33a   :  { %820 = vmatpush1.bf16.msra.mxu1 %v1144_v10 }
 0x33b   :  { %821 = vmatprep.subr.bf16.mxu1 %v1149_v11 }
 0x33e   :  { %822 = vmatpush1.bf16.msra.mxu1 %v1147_v0 }
 0x33f   :  { %823 = vmatprep.subr.bf16.mxu1 %v1152_v12 }
 0x342   :  { %824 = vmatpush1.bf16.msra.mxu1 %v1150_v13 }
 0x343   :  { %825 = vmatprep.subr.bf16.mxu1 %v1155_v14 }
 0x346   :  { %826 = vmatpush1.bf16.msra.mxu1 %v1153_v15 }
 0x347   :  { %827 = vmatprep.subr.bf16.mxu1 %v1158_v24 }
 0x34a   :  { %828 = vmatpush1.bf16.msra.mxu1 %v1156_v25 }
 0x400   :  { %v584_v17 = vpop.f32.mrb[4].mxu1 }
 0x401   :  { %v585_v18 = vadd.f32 %v901_v16, %v584_v17  ;;  %v1058_v19 = vpop.f32.mrb[5].mxu1 }
 0x402   :  { %v587_v20 = vpop.f32.mrb[6].mxu1 }
 0x403   :  { %v590_v21 = vmax.f32 %v585_v18, 0.0  ;;  %v1059_v22 = vpop.f32.mrb[7].mxu1 }
 0x405   :  { %v591_v23 = vpack.c.bf16 %v590_v21, %v590_v21 }
 0x407   :  { %1077 = vmatmul.mubr.bf16.vlgmr.msra.gmra.mrb[8].mxu0 %v591_v23 }
 0x4da   :  { %v697_v28 = vpop.f32.mrb[8].mxu0 }
 0x4db   :  { %v698_v29 = vadd.f32 %v910_v27, %v697_v28  ;;  %v1078_v30 = vpop.f32.mrb[9].mxu0 }
 0x4dc   :  { %v700_v31 = vpop.f32.mrb[10].mxu0 }
 0x4dd   :  { %v703_v32 = vmax.f32 %v698_v29, 0.0  ;;  %v1079_v33 = vpop.f32.mrb[11].mxu0 }
 0x4df   :  { %v704_v34 = vpack.c.bf16 %v703_v32, %v703_v32 }
 0x4e1   :  { %846 = vmatmul.mubr.bf16.vlgmr.msra.gmra.mrb[8].mxu1 %v704_v34 }
 0x5b4   :  { %v847_v42 = vpop.f32.mrb[8].mxu1 }
 0x5b5   :  { %v848_v43 = vadd.f32 %v847_v42, %v726_v40  ;;  %v849_v44 = vpop.f32.mrb[9].mxu1 }
 0x5b6   :  { %v850_v45 = vadd.f32 %v849_v44, %v730_v41  ;;  %v851_v46 = vpop.f32.mrb[10].mxu1 }
 0x5b7   :  { %854 = vst [vmem:[#allocation14] sm:$0xff] %v848_v43  ;;  %v852_v47 = vpop.f32.mrb[11].mxu1 }
 0x5b8   :  { %855 = vst [vmem:[#allocation14 + $0x8] sm:$0xff] %v850_v45 }
 0x5b9   :  { %1324 = shalt.err (!%p1321_p4)
}
 0x5ba   :  { %s1325_s23 = scalar_lea.hbm %s1622_s13, 256 }
 0x5bb   :  { %p1326_p5 = scmp.ne.s32.totalorder %s1622_s13, %s1325_s23  ;;  %p1329_p6 = scmp.lt.u32.totalorder %s1325_s23, %s1622_s13 }
 0x5bd   :  { %p1331_p7 = pnand %p1329_p6, %p1326_p5 }
 0x5bf   :  { %1334 = shalt.err (!%p1331_p7)
}
 0x5c0   :  { %865 = dma.vmem_to_hbm [thread:$0]  %s863_s10, 256, %s1622_s13, [#allocation4]  }
 0x5c1   :  { %1343 = dma.done.wait [#allocation4], 256  }
 0x5c2   :  { %1344 = vsyncadd [#allocation4], 4294967040 }
 0x5c3   :  { %869 = vsyncpa [#allocation3], 1 }
 0x5c4   :  { %870 = vsyncpa [#allocation6], 1 }
 0x5c5   :  { %871 = vsyncpa [#allocation9], 1 }
 0x5c6   :  { %872 = vsyncpa [#allocation12], 1 }
 0x5c7   :  { %873 = vsyncpa [#allocation4], 1 }

</bundles_post_ra>
